<compile_context>
chip_gen: v7x
topology: tpu7x:2x2x1
jax: 0.10.0
libtpu: 0.0.40
codegen_flags: <defaults>
</compile_context>

<pallas_src>
import numpy as np
import jax
import jax.numpy as jnp
from jax.experimental import pallas as pl
from jax.experimental.pallas import tpu as pltpu

N_QUBITS = 4
N_LAYERS = 2
N_STATES = 1 << N_QUBITS        # 16 basis states
NUM_CLASSES = 3                 # config['num_classes']


def _build_gate_constants():
    """A[q]: (16,16) real matrix such that applying RY(theta) on qubit q is
         state_row <- cos(theta/2)*state_row + sin(theta/2) * (state_row @ A[q])
       cnot_ring: (16,16) permutation for CNOT(0,1) CNOT(1,2) CNOT(2,3) CNOT(3,0)."""
    A = np.zeros((N_QUBITS, N_STATES, N_STATES), np.float32)
    for q in range(N_QUBITS):
        for i in range(N_STATES):
            sign = -1.0 if ((i >> q) & 1) == 0 else 1.0
            A[q, i ^ (1 << q), i] = sign

    def cnot_mat(c, t):
        C = np.zeros((N_STATES, N_STATES), np.float32)
        for i in range(N_STATES):
            j = i ^ (((i >> c) & 1) << t)
            C[i, j] = 1.0
        return C

    ring = np.eye(N_STATES, dtype=np.float32)
    for q in range(N_QUBITS):
        ring = ring @ cnot_mat(q, (q + 1) % N_QUBITS)
    return jnp.asarray(A), jnp.asarray(ring)


def _layer_unitary_T(weights):
    """Composite unitary of the trainable layers (row-vector convention),
    transposed for the column (batch-on-lanes) kernel layout.  Computed once
    in the wrapper because weights are batch-independent."""
    A, ring = _build_gate_constants()
    eye = jnp.eye(N_STATES, dtype=jnp.float32)
    U = eye
    for l in range(N_LAYERS):
        for q in range(N_QUBITS):
            c = jnp.cos(weights[l, q] * 0.5)
            s = jnp.sin(weights[l, q] * 0.5)
            U = U @ (c * eye + s * A[q])
        U = U @ ring
    return U.T          # (16, 16)


def qml_kernel(x_ref, u_ref, out_ref):
    """x_ref: (N_QUBITS, TB)  features with batch on the lane axis
       u_ref: (16, 16)        transposed composite layer unitary
       out_ref: (NUM_CLASSES, TB)"""
    TB = x_ref.shape[1]

    # ---- angle embedding: closed-form product state (pure VPU) -------------
    # After RY(x_q) on |0..0>:  state[i, b] = prod_q (cos(x_q/2) if bit_q(i)==0
    #                                                 else sin(x_q/2))
    half_x = x_ref[...] * 0.5                       # (N_QUBITS, TB)
    cx = jnp.cos(half_x)
    sx = jnp.sin(half_x)

    row = jax.lax.broadcasted_iota(jnp.int32, (N_STATES, TB), 0)  # basis index
    state = jnp.ones((N_STATES, TB), jnp.float32)
    for q in range(N_QUBITS):
        bit = (row >> q) & 1
        state = state * jnp.where(bit == 0, cx[q:q + 1, :], sx[q:q + 1, :])

    # ---- trainable entangling layers: one precomputed 16x16 unitary --------
    state = jnp.dot(u_ref[...], state, preferred_element_type=jnp.float32)

    # ---- measurement probabilities + class slice (QMLModel.forward) --------
    probs = state * state                           # (16, TB)
    out_ref[...] = probs[:NUM_CLASSES, :]           # lane-dense store


def qml_forward(weights, x, *, tile_b=512):
    """Pallas equivalent of QMLModel.forward(input)."""
    if x.ndim == 1:                                 # mirrors the 1-D probs branch
        x = x[None]
    x = x.astype(jnp.float32)
    weights = weights.astype(jnp.float32)

    B = x.shape[0]
    n_tiles = pl.cdiv(B, tile_b)
    Bp = n_tiles * tile_b
    if Bp != B:                                     # pad tail block (cos(0)=1 -> safe)
        x = jnp.pad(x, ((0, Bp - B), (0, 0)))
    xT = x.T                                        # (N_QUBITS, Bp)

    UT = _layer_unitary_T(weights)                  # (16, 16), batch-independent

    out = pl.pallas_call(
        qml_kernel,
        out_shape=jax.ShapeDtypeStruct((NUM_CLASSES, Bp), jnp.float32),
        grid_spec=pltpu.PrefetchScalarGridSpec(
            num_scalar_prefetch=0,
            grid=(n_tiles,),
            in_specs=[
                pl.BlockSpec((N_QUBITS, tile_b), lambda i: (0, i)),
                pl.BlockSpec((N_STATES, N_STATES), lambda i: (0, 0)),
            ],
            out_specs=pl.BlockSpec((NUM_CLASSES, tile_b), lambda i: (0, i)),
        ),
        compiler_params=pltpu.CompilerParams(dimension_semantics=("parallel",)),
    )(xT, UT)

    return out.T[:B]                                # (B, NUM_CLASSES)


def qml_reference(weights, x):
    """Pure-JAX reference of the same synthetic qnode + forward slice."""
    if x.ndim == 1:
        x = x[None]
    B = x.shape[0]
    _, ring = _build_gate_constants()
    state = jnp.zeros((B, N_STATES), jnp.float32).at[:, 0].set(1.0)

    def apply_ry(state, theta, q):
        st = state.reshape((B,) + (2,) * N_QUBITS)
        axis = 1 + (N_QUBITS - 1 - q)               # bit q of the basis index
        st = jnp.moveaxis(st, axis, -1)
        c = jnp.cos(theta / 2.0).reshape((B,) + (1,) * (N_QUBITS - 1))
        s = jnp.sin(theta / 2.0).reshape((B,) + (1,) * (N_QUBITS - 1))
        a0, a1 = st[..., 0], st[..., 1]
        st = jnp.stack([c * a0 - s * a1, s * a0 + c * a1], axis=-1)
        st = jnp.moveaxis(st, -1, axis)
        return st.reshape(B, N_STATES)

    for q in range(N_QUBITS):
        state = apply_ry(state, x[:, q], q)
    for l in range(N_LAYERS):
        for q in range(N_QUBITS):
            state = apply_ry(state, jnp.full((B,), weights[l, q]), q)
        state = state @ ring
    probs = state * state
    return probs[:, :NUM_CLASSES]


if __name__ == "__main__":
    key = jax.random.PRNGKey(0)
    kw, kx = jax.random.split(key)
    weights = jax.random.normal(kw, (N_LAYERS, N_QUBITS), jnp.float32) * 0.1

    # Batch deliberately NOT a multiple of tile_b to exercise the padding path
    # (two grid steps with the default tile_b=512).
    B = 600
    x = jax.random.normal(kx, (B, N_QUBITS), jnp.float32)

    out = qml_forward(weights, x)
    out = jax.block_until_ready(out)

    ref = qml_reference(weights, x)
    assert out.shape == (B, NUM_CLASSES)
    np.testing.assert_allclose(np.asarray(out), np.asarray(ref),
                               rtol=1e-5, atol=1e-5)

    # 1-D input branch of QMLModel.forward
    out1 = jax.block_until_ready(qml_forward(weights, x[0]))
    assert out1.shape == (1, NUM_CLASSES)
    np.testing.assert_allclose(np.asarray(out1), np.asarray(ref[:1]),
                               rtol=1e-5, atol=1e-5)

    print("KERNEL_OK")
</pallas_src>

<mosaic_0001>
module attributes {stable_mosaic.version = 11 : i64} {
  func.func @qml_kernel(%arg0: i32, %arg1: memref<4x512xf32, #tpu.memory_space<vmem>>, %arg2: memref<16x16xf32, #tpu.memory_space<vmem>>, %arg3: memref<3x512xf32, #tpu.memory_space<vmem>>) attributes {dimension_semantics = [#tpu.dimension_semantics<parallel>], iteration_bounds = array<i64: 2>, scalar_prefetch = 0 : i64, scratch_operands = 0 : i64, tpu.core_type = #tpu.core_type<tc>, window_params = [{transform_indices = @transform_0, window_bounds = array<i64: 4, 512>}, {pipeline_mode = #tpu.pipeline_mode<synchronous>, transform_indices = @transform_1, window_bounds = array<i64: 16, 16>}, {transform_indices = @transform_2, window_bounds = array<i64: 3, 512>}]} {
    %c0 = arith.constant 0 : index
    %c0_0 = arith.constant 0 : index
    %0 = vector.load %arg1[%c0, %c0_0] : memref<4x512xf32, #tpu.memory_space<vmem>>, vector<4x512xf32>
    %cst = arith.constant 5.000000e-01 : f32
    %1 = vector.broadcast %cst : f32 to vector<4x512xf32>
    %2 = arith.mulf %0, %1 : vector<4x512xf32>
    %3 = math.cos %2 : vector<4x512xf32>
    %4 = math.sin %2 : vector<4x512xf32>
    %5 = tpu.iota {dimensions = array<i32: 0>} : vector<16x512xi32>
    %cst_1 = arith.constant 1.000000e+00 : f32
    %6 = vector.broadcast %cst_1 : f32 to vector<16x512xf32>
    %c0_i32 = arith.constant 0 : i32
    %7 = vector.broadcast %c0_i32 : i32 to vector<16x512xi32>
    %8 = arith.shrsi %5, %7 : vector<16x512xi32>
    %c1_i32 = arith.constant 1 : i32
    %9 = vector.broadcast %c1_i32 : i32 to vector<16x512xi32>
    %10 = arith.andi %8, %9 : vector<16x512xi32>
    %c0_i32_2 = arith.constant 0 : i32
    %11 = vector.broadcast %c0_i32_2 : i32 to vector<16x512xi32>
    %12 = arith.cmpi eq, %10, %11 : vector<16x512xi32>
    %13 = vector.extract_strided_slice %3 {offsets = [0, 0], sizes = [1, 512], strides = [1, 1]} : vector<4x512xf32> to vector<1x512xf32>
    %14 = vector.extract_strided_slice %4 {offsets = [0, 0], sizes = [1, 512], strides = [1, 1]} : vector<4x512xf32> to vector<1x512xf32>
    %15 = vector.shape_cast %13 : vector<1x512xf32> to vector<1x512xf32>
    %16 = vector.broadcast %15 : vector<1x512xf32> to vector<16x512xf32>
    %17 = vector.shape_cast %14 : vector<1x512xf32> to vector<1x512xf32>
    %18 = vector.broadcast %17 : vector<1x512xf32> to vector<16x512xf32>
    %19 = arith.select %12, %16, %18 : vector<16x512xi1>, vector<16x512xf32>
    %20 = arith.mulf %6, %19 : vector<16x512xf32>
    %c1_i32_3 = arith.constant 1 : i32
    %21 = vector.broadcast %c1_i32_3 : i32 to vector<16x512xi32>
    %22 = arith.shrsi %5, %21 : vector<16x512xi32>
    %c1_i32_4 = arith.constant 1 : i32
    %23 = vector.broadcast %c1_i32_4 : i32 to vector<16x512xi32>
    %24 = arith.andi %22, %23 : vector<16x512xi32>
    %c0_i32_5 = arith.constant 0 : i32
    %25 = vector.broadcast %c0_i32_5 : i32 to vector<16x512xi32>
    %26 = arith.cmpi eq, %24, %25 : vector<16x512xi32>
    %27 = vector.extract_strided_slice %3 {offsets = [1, 0], sizes = [1, 512], strides = [1, 1]} : vector<4x512xf32> to vector<1x512xf32>
    %28 = vector.extract_strided_slice %4 {offsets = [1, 0], sizes = [1, 512], strides = [1, 1]} : vector<4x512xf32> to vector<1x512xf32>
    %29 = vector.shape_cast %27 : vector<1x512xf32> to vector<1x512xf32>
    %30 = vector.broadcast %29 : vector<1x512xf32> to vector<16x512xf32>
    %31 = vector.shape_cast %28 : vector<1x512xf32> to vector<1x512xf32>
    %32 = vector.broadcast %31 : vector<1x512xf32> to vector<16x512xf32>
    %33 = arith.select %26, %30, %32 : vector<16x512xi1>, vector<16x512xf32>
    %34 = arith.mulf %20, %33 : vector<16x512xf32>
    %c2_i32 = arith.constant 2 : i32
    %35 = vector.broadcast %c2_i32 : i32 to vector<16x512xi32>
    %36 = arith.shrsi %5, %35 : vector<16x512xi32>
    %c1_i32_6 = arith.constant 1 : i32
    %37 = vector.broadcast %c1_i32_6 : i32 to vector<16x512xi32>
    %38 = arith.andi %36, %37 : vector<16x512xi32>
    %c0_i32_7 = arith.constant 0 : i32
    %39 = vector.broadcast %c0_i32_7 : i32 to vector<16x512xi32>
    %40 = arith.cmpi eq, %38, %39 : vector<16x512xi32>
    %41 = vector.extract_strided_slice %3 {offsets = [2, 0], sizes = [1, 512], strides = [1, 1]} : vector<4x512xf32> to vector<1x512xf32>
    %42 = vector.extract_strided_slice %4 {offsets = [2, 0], sizes = [1, 512], strides = [1, 1]} : vector<4x512xf32> to vector<1x512xf32>
    %43 = vector.shape_cast %41 : vector<1x512xf32> to vector<1x512xf32>
    %44 = vector.broadcast %43 : vector<1x512xf32> to vector<16x512xf32>
    %45 = vector.shape_cast %42 : vector<1x512xf32> to vector<1x512xf32>
    %46 = vector.broadcast %45 : vector<1x512xf32> to vector<16x512xf32>
    %47 = arith.select %40, %44, %46 : vector<16x512xi1>, vector<16x512xf32>
    %48 = arith.mulf %34, %47 : vector<16x512xf32>
    %c3_i32 = arith.constant 3 : i32
    %49 = vector.broadcast %c3_i32 : i32 to vector<16x512xi32>
    %50 = arith.shrsi %5, %49 : vector<16x512xi32>
    %c1_i32_8 = arith.constant 1 : i32
    %51 = vector.broadcast %c1_i32_8 : i32 to vector<16x512xi32>
    %52 = arith.andi %50, %51 : vector<16x512xi32>
    %c0_i32_9 = arith.constant 0 : i32
    %53 = vector.broadcast %c0_i32_9 : i32 to vector<16x512xi32>
    %54 = arith.cmpi eq, %52, %53 : vector<16x512xi32>
    %55 = vector.extract_strided_slice %3 {offsets = [3, 0], sizes = [1, 512], strides = [1, 1]} : vector<4x512xf32> to vector<1x512xf32>
    %56 = vector.extract_strided_slice %4 {offsets = [3, 0], sizes = [1, 512], strides = [1, 1]} : vector<4x512xf32> to vector<1x512xf32>
    %57 = vector.shape_cast %55 : vector<1x512xf32> to vector<1x512xf32>
    %58 = vector.broadcast %57 : vector<1x512xf32> to vector<16x512xf32>
    %59 = vector.shape_cast %56 : vector<1x512xf32> to vector<1x512xf32>
    %60 = vector.broadcast %59 : vector<1x512xf32> to vector<16x512xf32>
    %61 = arith.select %54, %58, %60 : vector<16x512xi1>, vector<16x512xf32>
    %62 = arith.mulf %48, %61 : vector<16x512xf32>
    %c0_10 = arith.constant 0 : index
    %c0_11 = arith.constant 0 : index
    %63 = vector.load %arg2[%c0_10, %c0_11] : memref<16x16xf32, #tpu.memory_space<vmem>>, vector<16x16xf32>
    %cst_12 = arith.constant dense<0.000000e+00> : vector<16x512xf32>
    %64 = tpu.matmul %63, %62, %cst_12 {dimension_numbers = #tpu.dot_dimension_numbers<[1], [0], [0], [1], [0, 0, 1, 1], [], []>} : vector<16x16xf32>, vector<16x512xf32>, vector<16x512xf32> -> vector<16x512xf32>
    %65 = arith.mulf %64, %64 : vector<16x512xf32>
    %66 = vector.extract_strided_slice %65 {offsets = [0, 0], sizes = [3, 512], strides = [1, 1]} : vector<16x512xf32> to vector<3x512xf32>
    %c0_13 = arith.constant 0 : index
    %c0_14 = arith.constant 0 : index
    %67 = vector.load %arg3[%c0_13, %c0_14] : memref<3x512xf32, #tpu.memory_space<vmem>>, vector<3x512xf32>
    tpu.vector_store %arg3[%c0_13, %c0_14], %66 {strides = array<i32>} : memref<3x512xf32, #tpu.memory_space<vmem>>, vector<3x512xf32>,
    return
  }
  func.func @transform_0(%arg0: i32) -> (i32, i32) {
    %c0_i32 = arith.constant 0 : i32
    %c0_i32_0 = arith.constant 0 : i32
    return %c0_i32, %arg0 : i32, i32
  }
  func.func @transform_1(%arg0: i32) -> (i32, i32) {
    %c0_i32 = arith.constant 0 : i32
    %c0_i32_0 = arith.constant 0 : i32
    %c0_i32_1 = arith.constant 0 : i32
    return %c0_i32, %c0_i32_0 : i32, i32
  }
  func.func @transform_2(%arg0: i32) -> (i32, i32) {
    %c0_i32 = arith.constant 0 : i32
    %c0_i32_0 = arith.constant 0 : i32
    return %c0_i32, %arg0 : i32, i32
  }
}

</mosaic_0001>

<bundles_post_ra>
// kernel: tpu_custom_call.1
= control target key start
LH: loop header
LB: loop body
LE: loop exit
PB: predicated region body
PF: predicated region fallthrough
CT: control target
= control target key end

     0   :  { %7 = vsyncpa [#allocation3], 0  ;;  %s2054_s0 = inlined_call_operand.hbm [shape: f32[4,1024], index: 0, kind: input, shape index: {}]   ;;  %s2055_s1 = inlined_call_operand.hbm [shape: f32[16,16], index: 1, kind: input, shape index: {}]   ;;  %s2056_s2 = inlined_call_operand.hbm [shape: f32[3,1024], index: 2, kind: output, shape index: {}]  }
   0x1   :  { %9 = vsyncpa [#allocation3 + $0x1], 0 }
   0x2   :  { %10 = vsyncpa [#allocation6], 0 }
   0x3   :  { %11 = vsyncpa [#allocation4], 0 }
   0x4   :  { %13 = vsyncpa [#allocation4 + $0x1], 0  ;;  %s1521_s9 = smov 0   ;;  %s1523_s10 = smov 0  }
   0x5   :  { %s1525_s11 = smov 0   ;;  %s1527_s12 = smov 0  }
   0x6 LB: > { %s1542_s13 = sadd.s32 4294967295, %s1492_s12   ;;  %s1236_s14 = sadd.s32 4294967294, %s1492_s12   ;;  %s1492_s12 = sphi %s1527_s12, %s2086_s12   ;;  %s1488_s11 = sphi %s1525_s11, %s2085_s11   ;;  %s1484_s10 = sphi %s1523_s10, %s2084_s10   ;;  %s1480_s9 = sphi %s1521_s9, %s2083_s9  }
   0x7   : > { %p39_p0 = scmp.ne.s32.totalorder %s1484_s10, %s1480_s9  ;;  %p2057_p1 = scmp.eq.s32.totalorder %s1542_s13, 0 }
   0x8   : > { %p90_p3 = scmp.eq.s32.totalorder %s1236_s14, 1  ;;  %p1237_p5 = scmp.ge.s32.totalorder %s1492_s12, 1 }
   0x9   : > { %p1551_p4 = por %p2057_p1, %p39_p0  ;;  %p97_p7 = scmp.lt.s32.totalorder %s1492_s12, 3 }
   0xa   : > { %p1556_p6 = por %p90_p3, %p39_p0  ;;  %s1494_s18 = smov [#allocation5]  }
   0xb   : > { %s2060_s15 = scalar_select %p1551_p4, 1, 0 }
   0xc   : > { %s2061_s16 = scalar_select %p1556_p6, 1, 0 }
   0xd   : > { %p1561_p8 = pnand %p1237_p5, %p97_p7  ;;  %s109_s19 = sshll.u32 %s1494_s18, 4  ;;  %s1565_s19 = int_to_ptr.vmem [resolvable:$true] %s109_s19 }
   0xe   : > { %s1577_s21 = sadd.s32 1, %s1492_s12   ;;  %s26_s22 = sadd.s32 1, %s1488_s11 }
   0xf   : > { %s2062_s17 = scalar_select %p1561_p8, 1, 0 }
  0x10   : > { %p1298_p9 = pneg %p1561_p8  ;;  %s23_s23 = ssub.s32 %s1492_s12, %s1577_s21 }
  0x11   : > { %s1364_s26 = scalar_lea.hbm %s2055_s1, 256 }
  0x12   : > { %p1572_p11 = pnand %p1298_p9, %p2057_p1  ;;  %p1365_p12 = scmp.ne.s32.totalorder %s2055_s1, %s1364_s26 }
  0x13   : > { %p1371_p5 = scmp.lt.u32.totalorder %s1364_s26, %s2055_s1 }
  0x14   : > { %p1366_p13 = pneg %p1572_p11 }
  0x16   : > { %p1367_p0 = pnand %p1366_p13, %p1365_p12 }
  0x18   : > { %p1368_p3 = pneg %p1367_p0 }
  0x1a   : > { %p1373_p7 = pnand %p1371_p5, %p1368_p3 }
  0x1c   : > { %1376 = shalt.err (!%p1373_p7)
}
  0x1d   : > { %s1377_s3 = scalar_lea.vmem %s1565_s19, 256  ;;  %p1385_p2 = scmp.lt.s32.totalorder %s1565_s19, %s1565_s19 }
  0x1e   : > { %p1378_p9 = scmp.ne.s32.totalorder %s1565_s19, %s1377_s3  ;;  %p1386_p6 = scmp.lt.s32.totalorder %s1377_s3, %s1377_s3 }
  0x20   : > { %p1380_p10 = pnand %p1378_p9, %p1366_p13  ;;  %p1387_p4 = por %p1386_p6, %p1385_p2 }
  0x22   : > { %p1381_p1 = pneg %p1380_p10 }
  0x24   : > { %p1388_p8 = pnand %p1387_p4, %p1381_p1 }
  0x26   : > { %1391 = shalt.err (!%p1388_p8)
}
  0x27   : > { %s1495_s4 = smov 128   ;;  %s1496_s5 = smov 8  }
  0x28   : > { %1301 = dma.hbm_to_vmem [thread:$0]  (!%p1572_p11), %s2055_s1, 256, %s1565_s19, [#allocation6], %s1495_s4, %s1495_s4, %s1496_s5  }
  0x29   : > { %p24_p2 = scmp.eq.s32.totalorder %s23_s23, 0  ;;  %p33_p1 = scmp.ne.s32.totalorder %s1488_s11, %s1484_s10 }
  0x2a   : > { %p34_p4 = scmp.eq.s32.totalorder %s1492_s12, 0  ;;  %p1311_p6 = scmp.lt.s32.totalorder %s1492_s12, 2 }
  0x2b   : > { %s1608_s8 = scalar_select %p24_p2, %s1488_s11, %s26_s22  }
  0x2c   : > { %p35_p8 = por %p34_p4, %p33_p1  ;;  %p2064_p10 = scmp.eq.s32.totalorder %s1542_s13, 1 }
  0x2d   : > { %s123_s18 = sand.u32 1, %s1488_s11   ;;  %s1272_s24 = sshll.u32 %s1492_s12, 8 }
  0x2e   : > { %p1612_p12 = por %p2064_p10, %p33_p1  ;;  %s1240_s25 = sshll.u32 %s123_s18, 4 }
  0x2f   : > { %s1621_s27 = scalar_lea.hbm %s2054_s0, %s1272_s24  ;;  %s127_s19 = scalar_lea.vmem [#allocation2], %s1240_s25 }
  0x30   : > { %s135_s22 = sshll.u32 %s127_s19, 4  ;;  %p1623_p11 = pnand %p1311_p6, %p35_p8  ;;  %s1627_s22 = int_to_ptr.vmem [resolvable:$true] %s135_s22 }
  0x31   : > { %s124_s28 = scalar_lea.sflag [#allocation3], %s123_s18  ;;  %s1392_s29 = scalar_lea.hbm %s1621_s27, 256 }
  0x32   : > { %p1393_p13 = scmp.ne.s32.totalorder %s1621_s27, %s1392_s29  ;;  %p1394_p0 = pneg %p1623_p11 }
  0x33   : > { %s1397_s4 = scalar_lea.hbm %s2054_s0, 512  ;;  %p1398_p7 = scmp.lt.u32.totalorder %s1621_s27, %s2054_s0 }
  0x34   : > { %p1395_p3 = pnand %p1394_p0, %p1393_p13  ;;  %p1399_p9 = scmp.lt.u32.totalorder %s1397_s4, %s1392_s29 }
  0x35   : > { %p1401_p1 = scmp.lt.u32.totalorder %s1392_s29, %s1621_s27 }
  0x36   : > { %p1396_p5 = pneg %p1395_p3  ;;  %p1400_p2 = por %p1399_p9, %p1398_p7 }
  0x38   : > { %p1402_p4 = por %p1401_p1, %p1400_p2 }
  0x3a   : > { %p1403_p6 = pnand %p1402_p4, %p1396_p5 }
  0x3c   : > { %1406 = shalt.err (!%p1403_p6)
}
  0x3d   : > { %s1407_s7 = scalar_lea.vmem %s1627_s22, 256  ;;  %s1497_s18 = smov [#allocation2]  }
  0x3e   : > { %p1408_p8 = scmp.ne.s32.totalorder %s1627_s22, %s1407_s7  ;;  %s1412_s24 = sshll.u32 %s1497_s18, 4  ;;  %s1413_s24 = int_to_ptr.vmem [resolvable:$false] %s1412_s24 }
  0x3f   : > { %s1414_s25 = scalar_lea.vmem %s1413_s24, 512  ;;  %p1415_p3 = scmp.lt.s32.totalorder %s1627_s22, %s1413_s24 }
  0x40   : > { %p1410_p10 = pnand %p1408_p8, %p1394_p0  ;;  %p1416_p7 = scmp.lt.s32.totalorder %s1414_s25, %s1407_s7 }
  0x42   : > { %p1411_p13 = pneg %p1410_p10  ;;  %p1417_p9 = por %p1416_p7, %p1415_p3 }
  0x44   : > { %p1418_p2 = pnand %p1417_p9, %p1411_p13 }
  0x46   : > { %1421 = shalt.err (!%p1418_p2)
}
  0x47   : > { %1305 = dma.hbm_to_vmem [thread:$0]  (!%p1623_p11), %s1621_s27, 256, %s1627_s22, %s124_s28  }
  0x48   : > { %p2067_p5 = scmp.ne.s32.totalorder %s2062_s17, 0 }
  0x49   : > { %s1657_s20 = sand.u32 (!%p2067_p5), 1, %s1484_s10   ;;  %p2068_p0 = scmp.ne.s32.totalorder (!%p2067_p5), %s2060_s15, 0 }
  0x4a   : > { %144 = sbr.rel (%p2067_p5) target bundleno = 441 (0x1b9), region = 28  ;;  %s1244_s26 = sshll.u32 (!%p2067_p5), %s1657_s20, 4 }
  0x4b   : > { %s147_s19 = scalar_lea.sflag (!%p2067_p5), [#allocation3], %s1657_s20  ;;  %s150_s29 = scalar_lea.vmem (!%p2067_p5), [#allocation2], %s1244_s26 }
  0x51   : > { %1467 = dma.done.wait (%p2068_p0), %s147_s19, 256  }
  0x52   : > { %1469 = vsyncadd (%p2068_p0), %s147_s19, 4294967040  ;;  %p2069_p11 = scmp.eq.s32.totalorder %s1542_s13, 0 }
  0x54   : > { %1471 = dma.done.wait (%p2069_p11), [#allocation6], 256   ;;  %p2070_p1 = pmov %p2069_p11 }
  0x55   : > { %v1498_v0 = vmov 0.0   ;;  %v177_v1 = vld [vmem:[%s150_s29] sm:$0xff]  ;;  %v178_v5 = vld [vmem:[%s150_s29 + $0x8] sm:$0xff]  ;;  %v1499_v23 = vmov 683565275   ;;  %s174_s15 = scalar_lea.vmem [#allocation7], %s1244_s26 }
  0x56   : > { %1473 = vsyncadd (%p2070_p1), [#allocation6], 4294967040  ;;  %1041 = vmatprep.mubr.f32.mxu0 %v1498_v0  ;;  %1116 = vmatprep.mubr.f32.mxu1 %v1498_v0  ;;  %v1673_v2 = vmul.f32 0.5, %v177_v1  ;;  %v1679_v8 = vmul.f32 0.5, %v178_v5  ;;  %v1500_v25 = vmov 2475754826  }
  0x57   : > { %v1501_v27 = vmov 2131351028   ;;  %v1502_v29 = vmov 2102212464   ;;  %v1503_v31 = vmov 920167782  }
  0x58   : > { %v181_v3 = vand.u32 2147483647, %v1673_v2  ;;  %v184_v4 = vand.u32 2139095040, %v1673_v2  ;;  %v284_v10 = vand.u32 2147483647, %v1679_v8  ;;  %v287_v11 = vand.u32 2139095040, %v1679_v8 }
  0x59   : > { %v1504_v39 = vmov 1326507024   ;;  %vm183_vm14 = vcmp.lt.s32.totalorder %v1673_v2, 0  ;;  %s1273_s17 = sshll.u32 %s1542_s13, 8  ;;  %s1156_s27 = sshll.u32 %s174_s15, 4  ;;  %s2012_s27 = int_to_ptr.vmem [resolvable:$true] %s1156_s27 }
  0x5a   : > { %v185_v6 = vshrl.u32 %v184_v4, 23  ;;  %v188_v7 = vand.u32 8388607, %v181_v3  ;;  %v288_v14 = vshrl.u32 %v287_v11, 23  ;;  %v291_v17 = vand.u32 8388607, %v284_v10  ;;  %s2010_s28 = scalar_lea.hbm %s2056_s2, %s1273_s17 }
  0x5b   : > { %vm182_vm15 = vcmp.le.f32.partialorder %v181_v3, 0.7853982  ;;  %s1142_s30 = scalar_lea.sflag [#allocation4], %s1657_s20  ;;  %s1422_s3 = scalar_lea.vmem %s2012_s27, 256 }
  0x5c   : > { %v1247_v9 = vadd.s32 4294967169, %v185_v6  ;;  %v189_v13 = vor.u32 8388608, %v188_v7  ;;  %v1251_v16 = vadd.s32 4294967169, %v288_v14  ;;  %v292_v33 = vor.u32 8388608, %v291_v17  ;;  %p1423_p4 = scmp.ne.s32.totalorder %s2012_s27, %s1422_s3  ;;  %s1505_s13 = smov [#allocation7]  }
  0x5d   : > { %s1426_s4 = sshll.u32 %s1505_s13, 4  ;;  %s1427_s4 = int_to_ptr.vmem [resolvable:$false] %s1426_s4 }
  0x5e   : > { %v191_v12 = vadd.s32 1, %v1247_v9  ;;  %v1685_v20 = vshll.u32 %v189_v13, 8  ;;  %v294_v21 = vadd.s32 1, %v1251_v16  ;;  %v332_v61 = vshll.u32 %v292_v33, 8  ;;  %p1424_p6 = pnand %p1423_p4, %p1612_p12  ;;  %s1428_s5 = scalar_lea.vmem %s1427_s4, 512 }
  0x5f   : > { %p1429_p10 = scmp.lt.s32.totalorder %s2012_s27, %s1427_s4  ;;  %p1430_p13 = scmp.lt.s32.totalorder %s1428_s5, %s1422_s3 }
  0x60   : > { %vm192_vm0 = vcmp.gt.s32.totalorder %v191_v12, 0  ;;  %vm295_vm4 = vcmp.gt.s32.totalorder %v294_v21, 0  ;;  %p1425_p8 = pneg %p1424_p6 }
  0x61   : > { %v193_v15 = vsel %vm192_vm0, %v191_v12, 0  ;;  %v296_v46 = vsel %vm295_vm4, %v294_v21, 0  ;;  %vm286_vm0 = vcmp.lt.s32.totalorder %v1679_v8, 0  ;;  %p1431_p3 = por %p1430_p13, %p1429_p10 }
  0x62   : > { %v194_v18 = vshrl.u32 %v193_v15, 5  ;;  %v195_v19 = vand.u32 31, %v193_v15  ;;  %v297_v56 = vshrl.u32 %v296_v46, 5  ;;  %v298_v57 = vand.u32 31, %v296_v46 }
  0x63   : > { %p1432_p7 = pnand %p1431_p3, %p1425_p8 }
  0x64   : > { %v196_v22 = vsub.s32 32, %v195_v19  ;;  %v198_v24 = vshll.u32 %v1499_v23, %v195_v19  ;;  %v201_v26 = vshll.u32 %v1500_v25, %v195_v19  ;;  %v204_v28 = vshll.u32 %v1501_v27, %v195_v19 }
  0x65   : > { %v207_v30 = vshll.u32 %v1502_v29, %v195_v19  ;;  %v210_v32 = vshll.u32 %v1503_v31, %v195_v19  ;;  %vm213_vm1 = vcmp.lt.s32.totalorder %v194_v18, 1  ;;  %vm214_vm2 = vcmp.lt.s32.totalorder %v194_v18, 2 }
  0x66   : > { %v197_v34 = vshrl.u32 %v1499_v23, %v196_v22  ;;  %v199_v35 = vshrl.u32 %v1500_v25, %v196_v22  ;;  %v202_v36 = vshrl.u32 %v1501_v27, %v196_v22  ;;  %v205_v37 = vshrl.u32 %v1502_v29, %v196_v22 }
  0x67   : > { %v208_v38 = vshrl.u32 %v1503_v31, %v196_v22  ;;  %v211_v40 = vshrl.u32 %v1504_v39, %v196_v22  ;;  %vm216_vm3 = vcmp.lt.s32.totalorder %v194_v18, 4  ;;  %vm215_vm5 = vcmp.lt.s32.totalorder %v194_v18, 3 }
  0x68   : > { %v200_v41 = vor.u32 %v199_v35, %v198_v24  ;;  %v203_v42 = vor.u32 %v202_v36, %v201_v26  ;;  %v206_v43 = vor.u32 %v205_v37, %v204_v28  ;;  %v299_v5 = vsub.s32 32, %v298_v57 }
  0x69   : > { %v209_v44 = vor.u32 %v208_v38, %v207_v30  ;;  %v212_v45 = vor.u32 %v211_v40, %v210_v32  ;;  %v301_v6 = vshll.u32 %v1499_v23, %v298_v57  ;;  %v304_v7 = vshll.u32 %v1500_v25, %v298_v57 }
  0x6a   : > { %v217_v47 = vsel %vm213_vm1, %v197_v34, %v200_v41  ;;  %v218_v48 = vsel %vm216_vm3, %v206_v43, 2102212464  ;;  %v221_v49 = vsel %vm213_vm1, %v200_v41, %v203_v42  ;;  %v225_v50 = vsel %vm213_vm1, %v203_v42, %v206_v43 }
  0x6b   : > { %v219_v51 = vsel %vm215_vm5, %v203_v42, %v218_v48  ;;  %v222_v52 = vsel %vm216_vm3, %v209_v44, 920167782  ;;  %v226_v53 = vsel %vm216_vm3, %v212_v45, 1326507024  ;;  %v307_v9 = vshll.u32 %v1501_v27, %v298_v57 }
  0x6c   : > { %v223_v54 = vsel %vm215_vm5, %v206_v43, %v222_v52  ;;  %v227_v55 = vsel %vm215_vm5, %v209_v44, %v226_v53  ;;  %v220_v58 = vsel %vm214_vm2, %v217_v47, %v219_v51  ;;  %v310_v12 = vshll.u32 %v1502_v29, %v298_v57 }
  0x6d   : > { %v224_v59 = vsel %vm214_vm2, %v221_v49, %v223_v54  ;;  %v228_v60 = vsel %vm214_vm2, %v225_v50, %v227_v55  ;;  %v236_v11 = vmul.u32 %v1685_v20, %v220_v58  ;;  %v313_v13 = vshll.u32 %v1503_v31, %v298_v57 }
  0x6e   : > { %v1694_v62 = vmul.u32.u64.low %v1685_v20, %v228_v60  ;;  %v1695_v63 = vmul.u32.u64.high %v1685_v20, %v228_v60, %v1694_v62  ;;  %v1698_v1 = vmul.u32.u64.low %v1685_v20, %v224_v59  ;;  %v1699_v4 = vmul.u32.u64.high %v1685_v20, %v224_v59, %v1698_v1 }
  0x6f   : > { %vm316_vm6 = vcmp.lt.s32.totalorder %v297_v56, 1  ;;  %v300_v14 = vshrl.u32 %v1499_v23, %v299_v5  ;;  %v302_v15 = vshrl.u32 %v1500_v25, %v299_v5  ;;  %v305_v16 = vshrl.u32 %v1501_v27, %v299_v5 }
  0x70   : > { %v308_v17 = vshrl.u32 %v1502_v29, %v299_v5  ;;  %vm238_vm7 = vc.u32 %v1695_v63, %v1698_v1  ;;  %v239_v18 = vadd.s32 1, %v1699_v4  ;;  %v311_v19 = vshrl.u32 %v1503_v31, %v299_v5 }
  0x71   : > { %vm317_vm8 = vcmp.lt.s32.totalorder %v297_v56, 2  ;;  %v303_v21 = vor.u32 %v302_v15, %v301_v6  ;;  %v306_v22 = vor.u32 %v305_v16, %v304_v7  ;;  %v314_v26 = vshrl.u32 %v1504_v39, %v299_v5 }
  0x72   : > { %v309_v24 = vor.u32 %v308_v17, %v307_v9  ;;  %v240_v28 = vsel %vm238_vm7, %v239_v18, %v1699_v4  ;;  %v312_v20 = vor.u32 %v311_v19, %v310_v12  ;;  %vm318_vm9 = vcmp.lt.s32.totalorder %v297_v56, 3 }
  0x73   : > { %vm319_vm10 = vcmp.lt.s32.totalorder %v297_v56, 4  ;;  %v241_v30 = vadd.s32 %v240_v28, %v236_v11  ;;  %v315_v23 = vor.u32 %v314_v26, %v313_v13  ;;  %v320_v25 = vsel %vm316_vm6, %v300_v14, %v303_v21 }
  0x74   : > { %v321_v27 = vsel %vm319_vm10, %v309_v24, 2102212464  ;;  %v324_v32 = vsel %vm316_vm6, %v303_v21, %v306_v22  ;;  %v325_v33 = vsel %vm319_vm10, %v312_v20, 920167782  ;;  %v328_v31 = vsel %vm316_vm6, %v306_v22, %v309_v24 }
  0x75   : > { %v322_v29 = vsel %vm318_vm9, %v306_v22, %v321_v27  ;;  %v242_v34 = vadd.s32 536870912, %v241_v30  ;;  %v326_v35 = vsel %vm318_vm9, %v309_v24, %v325_v33  ;;  %v329_v36 = vsel %vm319_vm10, %v315_v23, 1326507024 }
  0x76   : > { %v323_v37 = vsel %vm317_vm8, %v320_v25, %v322_v29  ;;  %v327_v38 = vsel %vm317_vm8, %v324_v32, %v326_v35  ;;  %v330_v39 = vsel %vm318_vm9, %v312_v20, %v329_v36  ;;  %v237_v59 = vadd.s32 %v1698_v1, %v1695_v63 }
  0x77   : > { %v243_v40 = vshrl.u32 %v242_v34, 30  ;;  %v331_v41 = vsel %vm317_vm8, %v328_v31, %v330_v39  ;;  %v1711_v42 = vmul.u32.u64.low %v332_v61, %v327_v38  ;;  %v1712_v43 = vmul.u32.u64.high %v332_v61, %v327_v38, %v1711_v42 }
  0x78   : > { %v1714_v44 = vmul.u32.u64.low %v332_v61, %v331_v41  ;;  %v1715_v45 = vmul.u32.u64.high %v332_v61, %v331_v41, %v1714_v44  ;;  %v339_v47 = vmul.u32 %v332_v61, %v323_v37  ;;  %v595_v17 = vlaneseq }
  0x79   : > { %v244_v46 = vshll.u32 %v243_v40, 30  ;;  %v342_v49 = vadd.s32 1, %v1712_v43  ;;  %v267_v21 = vsub.s32 4, %v243_v40  ;;  %vm1740_vm1 = vcmp.le.f32.partialorder %v284_v10, 0.7853982 }
  0x7a   : > { %vm341_vm11 = vc.u32 %v1715_v45, %v1711_v42  ;;  %v340_v63 = vadd.s32 %v1711_v42, %v1715_v45  ;;  %v1722_v22 = vshrl.u32 %v595_v17, 7  ;;  %vm273_vm2 = vweird.f32 %v1673_v2 }
  0x7b   : > { %v245_v48 = vsub.s32 %v241_v30, %v244_v46  ;;  %v343_v51 = vsel %vm341_vm11, %v342_v49, %v1712_v43  ;;  %v268_v23 = vsel %vm183_vm14, %v267_v21, %v243_v40 }
  0x7c   : > { %v344_v52 = vadd.s32 %v343_v51, %v339_v47  ;;  %v597_v33 = vadd.s32 8, %v1722_v22  ;;  %v270_v34 = vsel %vm182_vm15, 0, %v268_v23  ;;  %v598_v37 = vand.u32 1, %v1722_v22 }
  0x7d   : > { %v247_v50 = vsub.s32 0, %v245_v48  ;;  %v480_v40 = vadd.s32 3, %v270_v34  ;;  %v1734_v41 = vsub.s32 0, %v1722_v22  ;;  %v686_v42 = vshra.s32 %v1722_v22, 1 }
  0x7e   : > { %v345_v54 = vadd.s32 536870912, %v344_v52  ;;  %v687_v43 = vshra.s32 %v597_v33, 1  ;;  %v780_v44 = vshra.s32 %v1722_v22, 2  ;;  %v781_v45 = vshra.s32 %v597_v33, 2 }
  0x7f   : > { %v1248_v53 = vmin.u32 %v247_v50, %v245_v48  ;;  %v1748_v49 = vsub.s32 1, %v1722_v22  ;;  %v874_v50 = vshra.s32 %v1722_v22, 3  ;;  %v875_v10 = vshra.s32 %v597_v33, 3 }
  0x80   : > { %v346_v56 = vshrl.u32 %v345_v54, 30  ;;  %vm1780_vm6 = vcmp.eq.s32.totalorder %v598_v37, 0 }
  0x81   : > { %v249_v55 = vclz %v1248_v53  ;;  %v1754_v53 = vsub.s32 5, %v1722_v22 }
  0x82   : > { %v347_v58 = vshll.u32 %v346_v56, 30  ;;  %v370_v29 = vsub.s32 4, %v346_v56 }
  0x83   : > { %v1249_v57 = vadd.s32 4294967294, %v249_v55  ;;  %v481_v55 = vand.u32 3, %v480_v40 }
  0x84   : > { %v348_v61 = vsub.s32 %v344_v52, %v347_v58  ;;  %v371_v39 = vsel %vm286_vm0, %v370_v29, %v346_v56  ;;  %v274_v52 = vand.u32 3, %v270_v34  ;;  %v599_v56 = vand.u32 1, %v597_v33 }
  0x85   : > { %vm1250_vm12 = vcmp.lt.s32.totalorder %v1249_v57, 0  ;;  %v373_v51 = vsel %vm1740_vm1, 0, %v371_v39  ;;  %v1758_v58 = vand.u32 1, %v687_v43  ;;  %vm486_vm5 = vcmp.eq.s32.totalorder %v481_v55, 2 }
  0x86   : > { %v252_v60 = vsel %vm1250_vm12, 0, %v1249_v57  ;;  %v350_v6 = vsub.s32 0, %v348_v61  ;;  %v1756_v57 = vand.u32 1, %v686_v42  ;;  %vm276_vm3 = vcmp.eq.s32.totalorder %v274_v52, 0 }
  0x87   : > { %v253_v62 = vsub.s32 32, %v252_v60  ;;  %v254_v4 = vshll.u32 %v245_v48, %v252_v60  ;;  %v257_v5 = vsub.s32 4294967266, %v252_v60  ;;  %v1745_v48 = vsub.s32 4, %v1722_v22 }
  0x88   : > { %v1252_v11 = vmin.u32 %v350_v6, %v348_v61  ;;  %v1762_v60 = vand.u32 1, %v781_v45  ;;  %v1771_v6 = vand.u32 1, %v874_v50  ;;  %vm279_vm4 = vcmp.eq.s32.totalorder %v274_v52, 2 }
  0x89   : > { %v255_v7 = vshrl.u32 %v237_v59, %v253_v62  ;;  %v258_v9 = vadd.s32 127, %v257_v5  ;;  %v1760_v59 = vand.u32 1, %v780_v44  ;;  %v584_v62 = vadd.s32 3, %v373_v51 }
  0x8a   : > { %v352_v14 = vclz %v1252_v11  ;;  %v1769_v5 = vsub.s32 6, %v1722_v22  ;;  %vm1784_vm7 = vcmp.eq.s32.totalorder %v599_v56, 0  ;;  %vm690_vm8 = vcmp.eq.s32.totalorder %v1756_v57, 0 }
  0x8b   : > { %v256_v12 = vor.u32 %v255_v7, %v254_v4  ;;  %v259_v13 = vshll.u32 %v258_v9, 23  ;;  %v1766_v4 = vsub.s32 2, %v1722_v22  ;;  %v1773_v7 = vand.u32 1, %v875_v10 }
  0x8c   : > { %v1253_v18 = vadd.s32 4294967294, %v352_v14  ;;  %v1776_v9 = vsub.s32 3, %v1722_v22  ;;  %vm691_vm9 = vcmp.eq.s32.totalorder %v1758_v58, 0  ;;  %vm483_vm10 = vcmp.eq.s32.totalorder %v481_v55, 0 }
  0x8d   : > { %v260_v15 = vor.u32 4788187, %v259_v13  ;;  %v263_v16 = vcvt.s32.f32 %v256_v12  ;;  %vm784_vm11 = vcmp.eq.s32.totalorder %v1760_v59, 0 }
  0x8e   : > { %vm1254_vm13 = vcmp.lt.s32.totalorder %v1253_v18, 0 }
  0x8f   : > { %v261_v19 = vand.u32 2147483647, %v260_v15  ;;  %v355_v24 = vsel %vm1254_vm13, 0, %v1253_v18  ;;  %vm275_vm13 = vcmp.lt.s32.totalorder %v274_v52, 2 }
  0x90   : > { %v356_v26 = vsub.s32 32, %v355_v24  ;;  %v357_v28 = vshll.u32 %v348_v61, %v355_v24  ;;  %v360_v20 = vsub.s32 4294967266, %v355_v24 }
  0x91   : > { %v264_v1 = vmul.f32 %v263_v16, %v261_v19  ;;  %v1793_v16 = vand.u32 3, %v373_v51  ;;  %v1797_v19 = vand.u32 3, %v584_v62 }
  0x92   : > { %v358_v25 = vshrl.u32 %v340_v63, %v356_v26  ;;  %v361_v27 = vadd.s32 127, %v360_v20 }
  0x93   : > { %v265_v30 = vxor.u32 2147483648, %v264_v1  ;;  %vm378_vm12 = vcmp.lt.s32.totalorder %v1793_v16, 2 }
  0x94   : > { %v359_v35 = vor.u32 %v358_v25, %v357_v28  ;;  %v362_v36 = vshll.u32 %v361_v27, 23  ;;  %v1805_v28 = vsub.s32 7, %v1722_v22 }
  0x95   : > { %v266_v32 = vsel %vm183_vm14, %v265_v30, %v264_v1  ;;  %vm482_vm14 = vcmp.lt.s32.totalorder %v481_v55, 2 }
  0x96   : > { %v269_v31 = vsel %vm182_vm15, %v1673_v2, %v266_v32  ;;  %v363_v3 = vor.u32 4788187, %v362_v36  ;;  %v366_v38 = vcvt.s32.f32 %v359_v35  ;;  %vm878_vm15 = vcmp.eq.s32.totalorder %v1771_v6, 0 }
  0x97   : > { %1356 = vcosq.f32 %v269_v31 }
  0x98   : > { %1358 = vsinq.f32 %v269_v31  ;;  %v364_v47 = vand.u32 2147483647, %v363_v3 }
  0x9a   : > { %v367_v54 = vmul.f32 %v366_v38, %v364_v47 }
  0x9c   : > { %v368_v61 = vxor.u32 2147483648, %v367_v54 }
  0x9e   : > { %v369_v11 = vsel %vm286_vm0, %v368_v61, %v367_v54  ;;  %vm879_vm0 = vcmp.eq.s32.totalorder %v1773_v7, 0 }
  0x9f   : > { %v372_v15 = vsel %vm1740_vm1, %v1679_v8, %v369_v11  ;;  %vm379_vm1 = vcmp.eq.s32.totalorder %v1793_v16, 0 }
  0xa0   : > { %1360 = vcosq.f32 %v372_v15 }
  0xa1   : > { %v1357_v12 = vpop.eup %1356  ;;  %1362 = vsinq.f32 %v372_v15 }
  0xa2   : > { %v1359_v17 = vpop.eup %1358  ;;  %v280_v18 = vxor.u32 2147483648, %v1357_v12 }
  0xa3   : > { %v277_v21 = vxor.u32 2147483648, %v1359_v17 }
  0xa4   : > { %v281_v63 = vsel %vm279_vm4, %v280_v18, %v1359_v17  ;;  %v488_v1 = vsel %vm486_vm5, %v280_v18, %v1359_v17  ;;  %vm382_vm4 = vcmp.eq.s32.totalorder %v1793_v16, 2  ;;  %vm586_vm5 = vcmp.lt.s32.totalorder %v1797_v19, 2 }
  0xa5   : > { %v278_v24 = vsel %vm276_vm3, %v1357_v12, %v277_v21  ;;  %v485_v26 = vsel %vm483_vm10, %v1357_v12, %v277_v21  ;;  %vm376_vm3 = vweird.f32 %v1679_v8  ;;  %vm587_vm10 = vcmp.eq.s32.totalorder %v1797_v19, 0 }
  0xa6   : > { %v282_v20 = vsel %vm275_vm13, %v278_v24, %v281_v63  ;;  %v489_v30 = vsel %vm482_vm14, %v485_v26, %v488_v1  ;;  %vm590_vm13 = vcmp.eq.s32.totalorder %v1797_v19, 2 }
  0xa7   : > { %v1813_v23 = vsel %vm273_vm2, nan, %v282_v20  ;;  %v1817_v25 = vsel %vm273_vm2, nan, %v489_v30  ;;  %vm2077_vm2 = vcmp.eq.s32.totalorder %v1762_v60, 0  ;;  %v969_v60 = vld [vmem:[#allocation5 + $0x8] sm:$0xff] }
  0xa8   : > { %v611_v22 = vrot.slane %v1813_v23, %v1745_v48  ;;  %v649_v27 = vrot.slane %v1817_v25, %v1745_v48  ;;  %v699_v29 = vrot.slane %v1813_v23, %v1754_v53  ;;  %v735_v2 = vrot.slane %v1817_v25, %v1754_v53  ;;  %vm2079_vm14 = vmmov %vm2077_vm2 }
  0xa9   : > { %v793_v32 = vrot.slane %v1813_v23, %v1769_v5  ;;  %v829_v33 = vrot.slane %v1817_v25, %v1769_v5  ;;  %v887_v31 = vrot.slane %v1813_v23, %v1805_v28  ;;  %v923_v34 = vrot.slane %v1817_v25, %v1805_v28 }
  0xaa   : > { %v631_v35 = vrot.slane %v611_v22, %v1734_v41  ;;  %v669_v36 = vrot.slane %v649_v27, %v1734_v41  ;;  %v719_v37 = vrot.slane %v699_v29, %v1748_v49  ;;  %v755_v3 = vrot.slane %v735_v2, %v1748_v49  ;;  %v1361_v43 = vpop.eup %1360 }
  0xab   : > { %v813_v38 = vrot.slane %v793_v32, %v1766_v4  ;;  %v849_v39 = vrot.slane %v829_v33, %v1766_v4  ;;  %v907_v40 = vrot.slane %v887_v31, %v1776_v9  ;;  %v943_v42 = vrot.slane %v923_v34, %v1776_v9  ;;  %v1363_v50 = vpop.eup %1362 }
  0xac   : > { %v679_v44 = vsel %vm1780_vm6, %v631_v35, %v669_v36  ;;  %v683_v45 = vsel %vm1784_vm7, %v631_v35, %v669_v36  ;;  %v765_v46 = vsel %vm690_vm8, %v719_v37, %v755_v3  ;;  %v769_v47 = vsel %vm691_vm9, %v719_v37, %v755_v3 }
  0xad   : > { %v773_v51 = vmul.f32 %v765_v46, %v679_v44  ;;  %v777_v52 = vmul.f32 %v769_v47, %v683_v45  ;;  %v859_v10 = vsel %vm784_vm11, %v813_v38, %v849_v39  ;;  %v863_v54 = vsel %vm2077_vm2, %v813_v38, %v849_v39 }
  0xae   : > { %v953_v55 = vsel %vm878_vm15, %v907_v40, %v943_v42  ;;  %v957_v56 = vsel %vm879_vm0, %v907_v40, %v943_v42  ;;  %v380_v61 = vxor.u32 2147483648, %v1363_v50  ;;  %v383_v62 = vxor.u32 2147483648, %v1361_v43 }
  0xaf   : > { %v867_v11 = vmul.f32 %v859_v10, %v773_v51  ;;  %v871_v12 = vmul.f32 %v863_v54, %v777_v52  ;;  %v607_v15 = vrot.slane %v1813_v23, %v1734_v41  ;;  %v645_v17 = vrot.slane %v1817_v25, %v1734_v41 }
  0xb0   : > { %v381_v18 = vsel %vm379_vm1, %v1361_v43, %v380_v61  ;;  %v384_v21 = vsel %vm382_vm4, %v383_v62, %v1363_v50  ;;  %v589_v63 = vsel %vm587_vm10, %v1361_v43, %v380_v61  ;;  %v592_v1 = vsel %vm590_vm13, %v383_v62, %v1363_v50  ;;  %vm2080_vm1 = vmmov %vm2077_vm2 }
  0xb1   : > { %v961_v24 = vmul.f32 %v953_v55, %v867_v11  ;;  %v965_v26 = vmul.f32 %v957_v56, %v871_v12  ;;  %v385_v20 = vsel %vm378_vm12, %v381_v18, %v384_v21  ;;  %v593_v30 = vsel %vm586_vm5, %v589_v63, %v592_v1  ;;  %vm2078_vm12 = vmmov %vm2077_vm2 }
  0xb2   : > { %v1880_v22 = vsel %vm376_vm3, nan, %v385_v20  ;;  %v1884_v27 = vsel %vm376_vm3, nan, %v593_v30  ;;  %v627_v29 = vrot.slane %v607_v15, %v1734_v41  ;;  %v665_v2 = vrot.slane %v645_v17, %v1734_v41 }
  0xb3   : > { %v1274_v32 = vpack.c.bf16 %v965_v26, %v961_v24  ;;  %v619_v16 = vrot.slane %v1880_v22, %v1745_v48  ;;  %v657_v19 = vrot.slane %v1884_v27, %v1745_v48  ;;  %v707_v33 = vrot.slane %v1880_v22, %v1754_v53 }
  0xb4   : > { %v743_v31 = vrot.slane %v1884_v27, %v1754_v53  ;;  %v801_v8 = vrot.slane %v1880_v22, %v1769_v5  ;;  %v837_v34 = vrot.slane %v1884_v27, %v1769_v5  ;;  %v895_v35 = vrot.slane %v1880_v22, %v1805_v28 }
  0xb5   : > { %1275 = vmatprep.subr.bf16.mxu0 %v1274_v32  ;;  %v639_v36 = vrot.slane %v619_v16, %v1734_v41  ;;  %v677_v48 = vrot.slane %v657_v19, %v1734_v41  ;;  %v727_v37 = vrot.slane %v707_v33, %v1748_v49  ;;  %v931_v3 = vrot.slane %v1884_v27, %v1805_v28 }
  0xb6   : > { %v763_v53 = vrot.slane %v743_v31, %v1748_v49  ;;  %v821_v38 = vrot.slane %v801_v8, %v1766_v4  ;;  %v857_v39 = vrot.slane %v837_v34, %v1766_v4  ;;  %v915_v5 = vrot.slane %v895_v35, %v1776_v9 }
  0xb7   : > { %v681_v40 = vsel %vm1780_vm6, %v639_v36, %v677_v48  ;;  %v685_v42 = vsel %vm1784_vm7, %v639_v36, %v677_v48  ;;  %v951_v43 = vrot.slane %v931_v3, %v1776_v9  ;;  %v678_v44 = vsel %vm1780_vm6, %v627_v29, %v665_v2 }
  0xb8   : > { %v767_v28 = vsel %vm690_vm8, %v727_v37, %v763_v53  ;;  %v771_v45 = vsel %vm691_vm9, %v727_v37, %v763_v53  ;;  %v861_v46 = vsel %vm784_vm11, %v821_v38, %v857_v39  ;;  %v865_v47 = vsel %vm2078_vm12, %v821_v38, %v857_v39 }
  0xb9   : > { %v775_v50 = vmul.f32 %v767_v28, %v681_v40  ;;  %v779_v51 = vmul.f32 %v771_v45, %v685_v42  ;;  %v955_v52 = vsel %vm878_vm15, %v915_v5, %v951_v43  ;;  %v959_v10 = vsel %vm879_vm0, %v915_v5, %v951_v43 }
  0xba   : > { %v682_v54 = vsel %vm1784_vm7, %v627_v29, %v665_v2  ;;  %v695_v55 = vrot.slane %v1813_v23, %v1748_v49  ;;  %v731_v56 = vrot.slane %v1817_v25, %v1748_v49  ;;  %v789_v61 = vrot.slane %v1813_v23, %v1766_v4 }
  0xbb   : > { %v869_v62 = vmul.f32 %v861_v46, %v775_v50  ;;  %v873_v11 = vmul.f32 %v865_v47, %v779_v51  ;;  %v825_v12 = vrot.slane %v1817_v25, %v1766_v4  ;;  %v883_v15 = vrot.slane %v1813_v23, %v1776_v9 }
  0xbc   : > { %v715_v17 = vrot.slane %v695_v55, %v1748_v49  ;;  %v751_v18 = vrot.slane %v731_v56, %v1748_v49  ;;  %v809_v21 = vrot.slane %v789_v61, %v1766_v4  ;;  %v919_v63 = vrot.slane %v1817_v25, %v1776_v9 }
  0xbd   : > { %v963_v1 = vmul.f32 %v955_v52, %v869_v62  ;;  %v967_v24 = vmul.f32 %v959_v10, %v873_v11  ;;  %v845_v26 = vrot.slane %v825_v12, %v1766_v4  ;;  %v903_v20 = vrot.slane %v883_v15, %v1776_v9 }
  0xbe   : > { %v764_v30 = vsel %vm690_vm8, %v715_v17, %v751_v18  ;;  %v768_v23 = vsel %vm691_vm9, %v715_v17, %v751_v18  ;;  %v939_v29 = vrot.slane %v919_v63, %v1776_v9  ;;  %v615_v2 = vrot.slane %v1880_v22, %v1734_v41 }
  0xbf   : > { %v1278_v32 = vpack.c.bf16 %v967_v24, %v963_v1  ;;  %v772_v16 = vmul.f32 %v764_v30, %v678_v44  ;;  %v776_v25 = vmul.f32 %v768_v23, %v682_v54  ;;  %v858_v19 = vsel %vm784_vm11, %v809_v21, %v845_v26  ;;  %v968_v54 = vld [vmem:[#allocation5] sm:$0xff] }
  0xc0   : > { %v862_v33 = vsel %vm2079_vm14, %v809_v21, %v845_v26  ;;  %v952_v31 = vsel %vm878_vm15, %v903_v20, %v939_v29  ;;  %v956_v8 = vsel %vm879_vm0, %v903_v20, %v939_v29  ;;  %v635_v34 = vrot.slane %v615_v2, %v1734_v41 }
  0xc1   : > { %1279 = vmatprep.subr.bf16.mxu1 %v1278_v32  ;;  %v866_v35 = vmul.f32 %v858_v19, %v772_v16  ;;  %v870_v36 = vmul.f32 %v862_v33, %v776_v25  ;;  %v653_v48 = vrot.slane %v1884_v27, %v1734_v41  ;;  %v703_v37 = vrot.slane %v1880_v22, %v1748_v49 }
  0xc2   : > { %v739_v3 = vrot.slane %v1884_v27, %v1748_v49  ;;  %v797_v53 = vrot.slane %v1880_v22, %v1766_v4  ;;  %v833_v38 = vrot.slane %v1884_v27, %v1766_v4  ;;  %v891_v39 = vrot.slane %v1880_v22, %v1776_v9 }
  0xc3   : > { %v960_v5 = vmul.f32 %v952_v31, %v866_v35  ;;  %v964_v40 = vmul.f32 %v956_v8, %v870_v36  ;;  %v673_v42 = vrot.slane %v653_v48, %v1734_v41  ;;  %v723_v43 = vrot.slane %v703_v37, %v1748_v49 }
  0xc4   : > { %v759_v44 = vrot.slane %v739_v3, %v1748_v49  ;;  %v817_v28 = vrot.slane %v797_v53, %v1766_v4  ;;  %v853_v45 = vrot.slane %v833_v38, %v1766_v4  ;;  %v911_v46 = vrot.slane %v891_v39, %v1776_v9 }
  0xc5   : > { %v1276_v47 = vpack.c.bf16 %v964_v40, %v960_v5  ;;  %v680_v50 = vsel %vm1780_vm6, %v635_v34, %v673_v42  ;;  %v684_v22 = vsel %vm1784_vm7, %v635_v34, %v673_v42  ;;  %v927_v41 = vrot.slane %v1884_v27, %v1776_v9 }
  0xc6   : > { %v766_v51 = vsel %vm690_vm8, %v723_v43, %v759_v44  ;;  %v770_v49 = vsel %vm691_vm9, %v723_v43, %v759_v44  ;;  %v860_v4 = vsel %vm784_vm11, %v817_v28, %v853_v45  ;;  %v864_v52 = vsel %vm2080_vm1, %v817_v28, %v853_v45 }
  0xc7   : > { %1277 = vmatpush1.bf16.msra.mxu0 %v1276_v47  ;;  %v774_v13 = vmul.f32 %v766_v51, %v680_v50  ;;  %v778_v10 = vmul.f32 %v770_v49, %v684_v22  ;;  %v947_v14 = vrot.slane %v927_v41, %v1776_v9  ;;  %vm970_vm6 = vcmask 130048  }
  0xc9   : > { %v868_v27 = vmul.f32 %v860_v4, %v774_v13  ;;  %v872_v55 = vmul.f32 %v864_v52, %v778_v10  ;;  %v954_v57 = vsel %vm878_vm15, %v911_v46, %v947_v14  ;;  %v958_v58 = vsel %vm879_vm0, %v911_v46, %v947_v14 }
  0xca   : > { %1263 = vmatmul.mubr.msk.f32.vlgmr.msra.gmra.mrb[0].mxu0 %vm970_vm6, %v968_v54 }
  0xcb   : > { %v962_v59 = vmul.f32 %v954_v57, %v868_v27  ;;  %v966_v56 = vmul.f32 %v958_v58, %v872_v55  ;;  %1047 = vmatprep.mubr.f32.mxu0 %v1498_v0 }
  0xcd   : > { %v1280_v61 = vpack.c.bf16 %v966_v56, %v962_v59 }
  0xce   : > { %1264 = vmatmul.mubr.msk.f32.gmra.mrb[2].mxu0 %vm970_vm6, %v969_v60 }
  0xcf   : > { %1281 = vmatpush1.bf16.msra.mxu1 %v1280_v61 }
  0xd2   : > { %1265 = vmatmul.mubr.msk.f32.vlgmr.msra.gmra.mrb[0].mxu1 %vm970_vm6, %v968_v54 }
  0xd3   : > { %1122 = vmatprep.mubr.f32.mxu1 %v1498_v0 }
  0xd6   : > { %1266 = vmatmul.mubr.msk.f32.gmra.mrb[2].mxu1 %vm970_vm6, %v969_v60 }
 0x19d   : > { %v1043_v6 = vpop.f32.mrb[0].mxu0 }
 0x19e   : > { %v1127_v9 = vmul.f32 %v1043_v6, %v1043_v6  ;;  %v1045_v62 = vpop.f32.mrb[1].mxu0 }
 0x19f   : > { %v1128_v7 = vmul.f32 %v1045_v62, %v1045_v62 }
 0x1a1   : > { %v1135_v11 = vcombine.low %v1127_v9, %v1128_v7  ;;  %v1049_v12 = vpop.f32.mrb[2].mxu0 }
 0x1a2   : > { %v1050_v15 = vpop.f32.mrb[3].mxu0 }
 0x1a3   : > { %1139 = vst [vmem:[%s174_s15] sm:$0x77] %v1135_v11 }
 0x1a5   : > { %v1118_v17 = vpop.f32.mrb[0].mxu1 }
 0x1a6   : > { %v1129_v18 = vmul.f32 %v1118_v17, %v1118_v17  ;;  %v1120_v21 = vpop.f32.mrb[1].mxu1 }
 0x1a7   : > { %v1130_v63 = vmul.f32 %v1120_v21, %v1120_v21 }
 0x1a9   : > { %v1136_v0 = vcombine.low %v1129_v18, %v1130_v63  ;;  %v1124_v1 = vpop.f32.mrb[2].mxu1 }
 0x1aa   : > { %v1125_v24 = vpop.f32.mrb[3].mxu1 }
 0x1ab   : > { %1140 = vst [vmem:[%s174_s15 + $0x8] sm:$0x77] %v1136_v0 }
 0x1ac   : > { %1435 = shalt.err (!%p1432_p7)
}
 0x1ad   : > { %s1436_s6 = scalar_lea.hbm %s2010_s28, 256  ;;  %s1440_s24 = scalar_lea.hbm %s2056_s2, 512 }
 0x1ae   : > { %p1437_p9 = scmp.ne.s32.totalorder %s2010_s28, %s1436_s6  ;;  %p1441_p0 = scmp.lt.u32.totalorder %s2010_s28, %s2056_s2 }
 0x1af   : > { %p1442_p11 = scmp.lt.u32.totalorder %s1440_s24, %s1436_s6  ;;  %p1444_p4 = scmp.lt.u32.totalorder %s1436_s6, %s2010_s28 }
 0x1b0   : > { %p1438_p2 = pnand %p1437_p9, %p1612_p12 }
 0x1b1   : > { %p1443_p1 = por %p1442_p11, %p1441_p0 }
 0x1b2   : > { %p1439_p5 = pneg %p1438_p2 }
 0x1b3   : > { %p1445_p6 = por %p1444_p4, %p1443_p1 }
 0x1b5   : > { %p1446_p8 = pnand %p1445_p6, %p1439_p5 }
 0x1b7   : > { %1449 = shalt.err (!%p1446_p8)
}
 0x1b8   : > { %1296 = dma.vmem_to_hbm [thread:$0]  (%p1612_p12), %s2012_s27, 256, %s2010_s28, %s1142_s30  }
 0x1b9 PF: > { %s1168_s26 = sand.u32 1, %s1480_s9   ;;  %p2081_p10 = scmp.ne.s32.totalorder %s2061_s16, 0 }
 0x1ba   : > { %p2082_p13 = scmp.ge.s32.totalorder %s1492_s12, 2  ;;  %s1169_s19 = scalar_lea.sflag [#allocation4], %s1168_s26 }
 0x1bc   : > { %p1307_p3 = pnand %p2082_p13, %p2081_p10 }
 0x1be   : > { %1475 = dma.done.wait (!%p1307_p3), %s1169_s19, 256  }
 0x1bf   : > { %1477 = vsyncadd (!%p1307_p3), %s1169_s19, 4294967040  ;;  %p16_p7 = scmp.ge.s32.totalorder %s1577_s21, 4   ;;  %s2083_s9 = smov %s1484_s10 }
 0x1c0   : > { %s2084_s10 = smov %s1488_s11  ;;  %s2085_s11 = smov %s1608_s8 }
 0x1c1   : > { %s2086_s12 = smov %s1577_s21  ;;  %18 = sbr.rel (!%p16_p7) target bundleno = 6 (0x6), region = 77 }
 0x1c8   :  { %1174 = vsyncpa [#allocation3], 1 }
 0x1c9   :  { %1176 = vsyncpa [#allocation3 + $0x1], 1 }
 0x1ca   :  { %1177 = vsyncpa [#allocation6], 1 }
 0x1cb   :  { %1178 = vsyncpa [#allocation4], 1 }
 0x1cc   :  { %1180 = vsyncpa [#allocation4 + $0x1], 1 }

</bundles_post_ra>
